<compile_context>
chip_gen: v7x
topology: tpu7x:2x2x1
jax: 0.10.0
libtpu: 0.0.40
codegen_flags: <defaults>
</compile_context>

<pallas_src>
import functools

import jax
import jax.numpy as jnp
from jax.experimental import pallas as pl
from jax.experimental.pallas import tpu as pltpu


def _ls_ce_kernel(x_ref, tgt_ref, loss_ref, *, smoothing, n_total, tile_n):
    confidence = 1.0 - smoothing
    i = pl.program_id(0)

    x = x_ref[...].astype(jnp.float32)          # (TN, C), bf16/f16 upcast here
    tgt = tgt_ref[...]                          # (TN, 1) int32
    tn, c = x.shape

    # Numerically stable log-sum-exp (full lse, i.e. including the max shift).
    m = jnp.max(x, axis=-1, keepdims=True)                               # (TN, 1)
    shifted = x - m                                                      # (TN, C)
    sum_exp = jnp.sum(jnp.exp(shifted), axis=-1, keepdims=True)          # (TN, 1)
    lse = m + jnp.log(sum_exp)                                           # (TN, 1)

    # Gather x[target] via a (1, C) iota broadcast (no (TN, C) iota tensor),
    # and the smoothing mean directly from sum(x) -- both on raw x, so only
    # the exp path touches `shifted`.
    class_ids = jax.lax.broadcasted_iota(jnp.int32, (1, c), 1)           # (1, C)
    x_at_tgt = jnp.sum(jnp.where(class_ids == tgt, x, 0.0),
                       axis=-1, keepdims=True)                           # (TN, 1)
    sum_x = jnp.sum(x, axis=-1, keepdims=True)                           # (TN, 1)

    loss = lse - (confidence * x_at_tgt + (smoothing / c) * sum_x)       # (TN, 1)

    # Mask rows past the true N (garbage / NaN in a padded partial last tile).
    row_ids = i * tile_n + jax.lax.broadcasted_iota(jnp.int32, (tn, 1), 0)
    loss_ref[...] = jnp.where(row_ids < n_total, loss, 0.0)

    # TODO(synk): for very large C (>>32K) where one row of classes stresses
    # VMEM / load-store slots, add an unrolled inner loop over C-chunks with a
    # two-pass (max, then fused sums) online reduction.


def _vmem_limit_bytes():
    """Generation-aware scoped-VMEM request (~75% of physical per-core VMEM)."""
    cap = 64 * 1024 * 1024  # conservative fallback (v7x physical per-TC)
    try:
        info = pltpu.get_tpu_info()
        cap = int(getattr(info, "vmem_capacity_bytes", cap))
    except Exception:
        pass
    # v5e/v6e (128 MiB) -> 96 MiB, v7x (64 MiB) -> 48 MiB.
    return min((cap * 3) // 4, 96 * 1024 * 1024)


def _choose_tile_n(n, c, itemsize, vmem_limit):
    # Bytes of VMEM live per logits row: input tile is double-buffered by the
    # pipeline and the body holds roughly 3 f32 (TN, C) sized intermediates.
    bytes_per_row = c * (2 * itemsize + 3 * 4)
    tn = int(0.8 * vmem_limit) // max(1, bytes_per_row)
    # Sublane-packing multiple: 8 rows for f32, 16 for bf16, 32 for int8/fp8.
    mult = max(8, 32 // max(1, itemsize))
    tn = max(mult, (tn // mult) * mult)
    if tn >= n:
        # Whole problem fits in one tile.  Split into two when possible so the
        # ("parallel",) N axis can shard across megacore TensorCores (v7x);
        # one extra grid step (~0.35 us) is negligible on single-TC parts.
        if n > 2 * mult:
            half = (((n + 1) // 2) + mult - 1) // mult * mult
            tn = half if half < n else n
        else:
            tn = n
    return tn


def label_smoothing_cross_entropy(x, target, smoothing=0.1, tile_n=None):
    """x: (N, C) float logits (f32 or bf16, not pre-cast); target: (N,) int labels.

    Returns the scalar f32 mean label-smoothing cross-entropy loss.
    """
    n, c = x.shape
    target2d = target.astype(jnp.int32).reshape(n, 1)
    itemsize = jnp.dtype(x.dtype).itemsize
    vmem_limit = _vmem_limit_bytes()
    if tile_n is None:
        tile_n = _choose_tile_n(n, c, itemsize, vmem_limit)
    grid = (pl.cdiv(n, tile_n),)

    kernel = functools.partial(
        _ls_ce_kernel, smoothing=float(smoothing), n_total=n, tile_n=tile_n
    )

    per_row = pl.pallas_call(
        kernel,
        out_shape=jax.ShapeDtypeStruct((n, 1), jnp.float32),
        grid_spec=pltpu.PrefetchScalarGridSpec(
            num_scalar_prefetch=0,
            grid=grid,
            in_specs=[
                pl.BlockSpec((tile_n, c), lambda i: (i, 0)),   # logits tile
                pl.BlockSpec((tile_n, 1), lambda i: (i, 0)),   # target tile
            ],
            out_specs=pl.BlockSpec((tile_n, 1), lambda i: (i, 0)),  # per-row loss
        ),
        compiler_params=pltpu.CompilerParams(
            dimension_semantics=("parallel",),       # megacore-shardable over N
            vmem_limit_bytes=vmem_limit,
        ),
    )(x, target2d)

    # Tiny reduce outside the kernel (XLA pairwise sum; exact N rows).
    return jnp.sum(per_row, dtype=jnp.float32) * (1.0 / n)


def _reference(x, target, smoothing=0.1):
    confidence = 1.0 - smoothing
    logprobs = jax.nn.log_softmax(x.astype(jnp.float32), axis=-1)
    nll = -jnp.take_along_axis(logprobs, target[:, None], axis=-1)[:, 0]
    smooth = -jnp.mean(logprobs, axis=-1)
    return jnp.mean(confidence * nll + smoothing * smooth)


if __name__ == "__main__":
    key = jax.random.PRNGKey(0)
    k1, k2, k3, k4, k5, k6, k7, k8 = jax.random.split(key, 8)

    # Test 1: small, single tile (N=8, C=32), auto tile_n.
    x1 = jax.random.normal(k1, (8, 32), dtype=jnp.float32)
    t1 = jax.random.randint(k2, (8,), 0, 32, dtype=jnp.int32)
    loss1 = label_smoothing_cross_entropy(x1, t1, smoothing=0.1)
    jax.block_until_ready(loss1)
    ref1 = _reference(x1, t1, smoothing=0.1)
    assert jnp.allclose(loss1, ref1, atol=1e-5, rtol=1e-5), (loss1, ref1)

    # Test 2: multiple full tiles over N with parallel grid (tile_n=16, grid=3).
    x2 = jax.random.normal(k3, (48, 256), dtype=jnp.float32)
    t2 = jax.random.randint(k4, (48,), 0, 256, dtype=jnp.int32)
    loss2 = label_smoothing_cross_entropy(x2, t2, smoothing=0.1, tile_n=16)
    jax.block_until_ready(loss2)
    ref2 = _reference(x2, t2, smoothing=0.1)
    assert jnp.allclose(loss2, ref2, atol=1e-5, rtol=1e-5), (loss2, ref2)

    # Test 3: partial last tile (N=20, tile_n=16) -- padding rows masked.
    x3 = jax.random.normal(k5, (20, 128), dtype=jnp.float32)
    t3 = jax.random.randint(k6, (20,), 0, 128, dtype=jnp.int32)
    loss3 = label_smoothing_cross_entropy(x3, t3, smoothing=0.1, tile_n=16)
    jax.block_until_ready(loss3)
    ref3 = _reference(x3, t3, smoothing=0.1)
    assert jnp.allclose(loss3, ref3, atol=1e-5, rtol=1e-5), (loss3, ref3)

    # Test 4: bf16 logits, auto tile_n (exercises mult-of-16 rounding + 2-tile
    # parallel split), kernel upcasts to f32 in VMEM.
    x4 = jax.random.normal(k7, (64, 128), dtype=jnp.bfloat16)
    t4 = jax.random.randint(k8, (64,), 0, 128, dtype=jnp.int32)
    loss4 = label_smoothing_cross_entropy(x4, t4, smoothing=0.1)
    jax.block_until_ready(loss4)
    ref4 = _reference(x4, t4, smoothing=0.1)
    assert jnp.allclose(loss4, ref4, atol=1e-4, rtol=1e-4), (loss4, ref4)

    print("KERNEL_OK")
</pallas_src>

<mosaic_0001>
module attributes {stable_mosaic.version = 11 : i64} {
  func.func @_ls_ce_kernel(%arg0: i32, %arg1: memref<8x32xf32, #tpu.memory_space<vmem>>, %arg2: memref<8x1xi32, #tpu.memory_space<vmem>>, %arg3: memref<8x1xf32, #tpu.memory_space<vmem>>) attributes {dimension_semantics = [#tpu.dimension_semantics<parallel>], iteration_bounds = array<i64: 1>, scalar_prefetch = 0 : i64, scratch_operands = 0 : i64, tpu.core_type = #tpu.core_type<tc>, window_params = [{transform_indices = @transform_0, window_bounds = array<i64: 8, 32>}, {transform_indices = @transform_1, window_bounds = array<i64: 8, 1>}, {transform_indices = @transform_2, window_bounds = array<i64: 8, 1>}]} {
    %c0 = arith.constant 0 : index
    %c0_0 = arith.constant 0 : index
    %0 = vector.load %arg1[%c0, %c0_0] : memref<8x32xf32, #tpu.memory_space<vmem>>, vector<8x32xf32>
    %c0_1 = arith.constant 0 : index
    %c0_2 = arith.constant 0 : index
    %1 = vector.load %arg2[%c0_1, %c0_2] : memref<8x1xi32, #tpu.memory_space<vmem>>, vector<8x1xi32>
    %cst = arith.constant dense<0xFF800000> : vector<8xf32>
    %2 = vector.multi_reduction <maximumf>, %0, %cst [1] : vector<8x32xf32> to vector<8xf32>
    %3 = vector.shape_cast %2 : vector<8xf32> to vector<8x1xf32>
    %4 = vector.broadcast %3 : vector<8x1xf32> to vector<8x32xf32>
    %5 = arith.subf %0, %4 : vector<8x32xf32>
    %6 = math.exp %5 : vector<8x32xf32>
    %cst_3 = arith.constant dense<0.000000e+00> : vector<8xf32>
    %7 = vector.multi_reduction <add>, %6, %cst_3 [1] : vector<8x32xf32> to vector<8xf32>
    %8 = vector.shape_cast %7 : vector<8xf32> to vector<8x1xf32>
    %9 = math.log %8 : vector<8x1xf32>
    %10 = arith.addf %3, %9 : vector<8x1xf32>
    %11 = tpu.iota {dimensions = array<i32: 1>} : vector<1x32xi32>
    %12 = vector.broadcast %11 : vector<1x32xi32> to vector<8x32xi32>
    %13 = vector.broadcast %1 : vector<8x1xi32> to vector<8x32xi32>
    %14 = arith.cmpi eq, %12, %13 : vector<8x32xi32>
    %cst_4 = arith.constant 0.000000e+00 : f32
    %15 = vector.broadcast %cst_4 : f32 to vector<8x32xf32>
    %16 = arith.select %14, %0, %15 : vector<8x32xi1>, vector<8x32xf32>
    %cst_5 = arith.constant dense<0.000000e+00> : vector<8xf32>
    %17 = vector.multi_reduction <add>, %16, %cst_5 [1] : vector<8x32xf32> to vector<8xf32>
    %18 = vector.shape_cast %17 : vector<8xf32> to vector<8x1xf32>
    %cst_6 = arith.constant dense<0.000000e+00> : vector<8xf32>
    %19 = vector.multi_reduction <add>, %0, %cst_6 [1] : vector<8x32xf32> to vector<8xf32>
    %20 = vector.shape_cast %19 : vector<8xf32> to vector<8x1xf32>
    %cst_7 = arith.constant 0.899999976 : f32
    %21 = vector.broadcast %cst_7 : f32 to vector<8x1xf32>
    %22 = arith.mulf %21, %18 : vector<8x1xf32>
    %cst_8 = arith.constant 3.125000e-03 : f32
    %23 = vector.broadcast %cst_8 : f32 to vector<8x1xf32>
    %24 = arith.mulf %23, %20 : vector<8x1xf32>
    %25 = arith.addf %22, %24 : vector<8x1xf32>
    %26 = arith.subf %10, %25 : vector<8x1xf32>
    %c8_i32 = arith.constant 8 : i32
    %27 = arith.muli %arg0, %c8_i32 : i32
    %28 = tpu.iota {dimensions = array<i32: 0>} : vector<8x1xi32>
    %29 = vector.broadcast %27 : i32 to vector<8x1xi32>
    %30 = arith.addi %29, %28 : vector<8x1xi32>
    %c8_i32_9 = arith.constant 8 : i32
    %31 = vector.broadcast %c8_i32_9 : i32 to vector<8x1xi32>
    %32 = arith.cmpi slt, %30, %31 : vector<8x1xi32>
    %cst_10 = arith.constant 0.000000e+00 : f32
    %33 = vector.broadcast %cst_10 : f32 to vector<8x1xf32>
    %34 = arith.select %32, %26, %33 : vector<8x1xi1>, vector<8x1xf32>
    %c0_11 = arith.constant 0 : index
    %c0_12 = arith.constant 0 : index
    %35 = vector.load %arg3[%c0_11, %c0_12] : memref<8x1xf32, #tpu.memory_space<vmem>>, vector<8x1xf32>
    tpu.vector_store %arg3[%c0_11, %c0_12], %34 {strides = array<i32>} : memref<8x1xf32, #tpu.memory_space<vmem>>, vector<8x1xf32>,
    return
  }
  func.func @transform_0(%arg0: i32) -> (i32, i32) {
    %c0_i32 = arith.constant 0 : i32
    %c0_i32_0 = arith.constant 0 : i32
    return %arg0, %c0_i32 : i32, i32
  }
  func.func @transform_1(%arg0: i32) -> (i32, i32) {
    %c0_i32 = arith.constant 0 : i32
    %c0_i32_0 = arith.constant 0 : i32
    return %arg0, %c0_i32 : i32, i32
  }
  func.func @transform_2(%arg0: i32) -> (i32, i32) {
    %c0_i32 = arith.constant 0 : i32
    %c0_i32_0 = arith.constant 0 : i32
    return %arg0, %c0_i32 : i32, i32
  }
}

</mosaic_0001>

<bundles_post_ra>
// kernel: tpu_custom_call.1
= control target key start
LH: loop header
LB: loop body
LE: loop exit
PB: predicated region body
PF: predicated region fallthrough
CT: control target
= control target key end

     0   :  { %vm13_vm0 = vcmask 261120   ;;  %v62_v1 = vmov 0   ;;  %v26_v7 = vlaneseq  ;;  %vm50_vm2 = vcmask 7168   ;;  %s91_s0 = inlined_call_operand.vmem [shape: f32[8,32], index: 0, kind: input, shape index: {}]   ;;  %s92_s1 = inlined_call_operand.vmem [shape: s32[8,1], index: 1, kind: input, shape index: {}]   ;;  %s93_s2 = inlined_call_operand.vmem [shape: f32[8,1], index: 2, kind: output, shape index: {}]  }
   0x1   :  { %v11_v0 = vld [vmem:[%s91_s0] sm:$0xff]  ;;  %57 = vset.pattern.permute.xlu0 %v62_v1 }
   0x2   :  { %v14_v2 = vsel %vm13_vm0, %v11_v0, -inf  ;;  %v12_v3 = vld [vmem:[%s92_s1] sm:$0xff]  ;;  %v27_v8 = vand.u32 127, %v26_v7  ;;  %v36_v14 = vsel %vm13_vm0, %v11_v0, 0.0 }
   0x3   :  { %15 = vmax.xlane.f32.xlu0 %v14_v2 }
  0x19   :  { %29 = vperm.xlu0 %57, %v12_v3  }
  0x90   :  { %v16_v4 = vpop.xlane.xlu0 %15 }
  0x91   :  { %v17_v5 = vsub.f32 %v11_v0, %v16_v4 }
  0x93   :  { %v18_v6 = vmul.f32 1.442695, %v17_v5 }
  0x95   :  { %58 = vpow2.f32 %v18_v6 }
  0x98   :  { %v30_v9 = vpop.permute.xlu0 %29 }
  0x99   :  { %vm31_vm1 = vcmp.eq.s32.totalorder %v27_v8, %v30_v9 }
  0x9a   :  { %v32_v11 = vsel %vm31_vm1, %v11_v0, 0.0 }
  0x9b   :  { %v33_v13 = vsel %vm13_vm0, %v32_v11, 0.0 }
  0x9f   :  { %v59_v10 = vpop.eup %58 }
  0xa0   :  { %v20_v12 = vsel %vm13_vm0, %v59_v10, 0.0 }
  0xa1   :  { %21 = vadd.xlane.f32.xlu1 %v20_v12 }
  0xa5   :  { %34 = vadd.xlane.f32.xlu1 %v33_v13 }
  0xa9   :  { %37 = vadd.xlane.f32.xlu1 %v36_v14 }
 0x12e   :  { %v22_v15 = vpop.xlane.xlu1 %21 }
 0x12f   :  { %60 = vlog2.f32 %v22_v15 }
 0x132   :  { %v35_v16 = vpop.xlane.xlu1 %34 }
 0x133   :  { %v39_v18 = vmul.f32 0.9, %v35_v16 }
 0x136   :  { %v38_v17 = vpop.xlane.xlu1 %37 }
 0x137   :  { %v40_v19 = vmul.f32 0.003125, %v38_v17 }
 0x139   :  { %v61_v20 = vpop.eup %60  ;;  %v41_v23 = vadd.f32 %v40_v19, %v39_v18 }
 0x13a   :  { %v24_v21 = vmul.f32 0.6931472, %v61_v20 }
 0x13c   :  { %v25_v22 = vadd.f32 %v24_v21, %v16_v4 }
 0x13e   :  { %v42_v24 = vsub.f32 %v25_v22, %v41_v23 }
 0x140   :  { %51 = vst.msk [vmem:[%s93_s2] sm:$0xff] %vm50_vm2, %v42_v24 }

</bundles_post_ra>
